<compile_context>
chip_gen: v5e
topology: v5e:2x2
jax: 0.10.0
libtpu: 0.0.40
codegen_flags: <defaults>
</compile_context>

<pallas_src>
import jax
import jax.numpy as jnp
from jax.experimental import pallas as pl
from jax.experimental.pallas import tpu as pltpu

CLASSES = 19
THRESHOLD = 0.9

_PRIOR = jnp.array(
    [32.07, 5.71, 20.7, 0.564, 0.761, 1.054, 0.1696, 0.5014, 13.4993, 0.8981,
     3.6445, 1.1458, 0.1393, 6.0, 0.2949, 0.1954, 0.2341, 0.0818, 0.3917],
    dtype=jnp.float32)


def _calib_kernel(w_ref, pred_ref, label_ref, wp_ref, counts_ref, sq_ref,
                  counts_part, sq_part):
    """One grid step = one (batch, shard) x TILE pixels (channel-major).

    w_ref:       (C, 1)      class weights (resident)
    pred_ref:    (C, TILE)   logits, channels on sublanes, pixels on lanes
    label_ref:   (1, TILE)   int32 labels (255 = ignore)
    wp_ref:      (C, TILE)   output: weighted, renormalized prediction
    counts_ref:  (C, 1)      per-(batch,shard) output: # pixels with conf > 0.9
    sq_ref:      (1, 1)      per-(batch,shard) output: sum of masked sq. error
    counts_part: (C, TILE)   VMEM scratch: lane-partial counts
    sq_part:     (1, TILE)   VMEM scratch: lane-partial squared error
    """
    t = pl.program_id(2)
    nt = pl.num_programs(2)

    @pl.when(t == 0)
    def _():
        counts_part[...] = jnp.zeros_like(counts_part)
        sq_part[...] = jnp.zeros_like(sq_part)

    logits = pred_ref[...].astype(jnp.float32)                # (C, TILE)
    w = w_ref[...]                                            # (C, 1)

    # Fused softmax + class re-weighting + renormalization:
    #   wp = exp(z - m) * w / sum_c(exp(z - m) * w)
    m = jnp.max(logits, axis=0, keepdims=True)                # (1, TILE)
    ew = jnp.exp(logits - m) * w                              # (C, TILE)
    denom = jnp.sum(ew, axis=0, keepdims=True)                # (1, TILE)

    # Threshold decision on the denominator side (exact, reciprocal-free).
    counts_part[...] += (ew > THRESHOLD * denom).astype(jnp.float32)

    # Normalization via approximate reciprocal (EUP slot; VALU-free).
    wp = ew * pl.reciprocal(denom, approx=True)               # (C, TILE)
    wp_ref[...] = wp.astype(wp_ref.dtype)

    # Masked squared error, reduced over the class axis per step (XLU),
    # accumulated as a (1, TILE) lane-partial.
    label = label_ref[...]                                    # (1, TILE) int32
    cls = jax.lax.broadcasted_iota(jnp.int32, wp.shape, 0)    # channel index
    one_hot = (label == cls).astype(jnp.float32)              # (C, TILE); 255->0
    diff = wp - one_hot
    sq_pix = jnp.sum(diff * diff, axis=0, keepdims=True)      # (1, TILE)
    sq_part[...] += jnp.where(label == 255, 0.0, sq_pix)

    @pl.when(t == nt - 1)
    def _():
        counts_ref[...] = jnp.sum(counts_part[...], axis=-1, keepdims=True)
        sq_ref[...] = jnp.sum(sq_part[...], axis=-1, keepdims=True)


def _pick_tile(hw, requested):
    """Largest pixel tile <= requested that divides hw and is lane-aligned."""
    t = min(requested, hw)
    if hw % t == 0 and (t % 128 == 0 or t == hw):
        return t
    for cand in range((t // 128) * 128, 0, -128):
        if hw % cand == 0:
            return cand
    return hw  # full-row tile is always legal (block == full array dim)


def calib_forward(prediction, label, weight, *, tile=16384,
                  wp_dtype=jnp.bfloat16):
    """prediction: (B, C, H, W) float (f32 or bf16); label: (B, H, W) int;
    weight: (C,) float.  Returns (all_loss, weighted_prediction[B,C,H,W])."""
    B, C, H, W = prediction.shape
    assert C == CLASSES
    HW = H * W
    N = B * HW

    tile = _pick_tile(HW, tile)
    num_t = HW // tile
    # Split the pixel-tile range into 2 parallel shards when possible so a
    # v7x chip keeps both TensorCores busy even at B == 1.
    num_shards = 2 if (num_t >= 2 and num_t % 2 == 0) else 1
    ntps = num_t // num_shards

    # No wrapper-side cast: bf16 logits from the producer are read as-is and
    # upcast in-register inside the kernel.
    pred_cm = prediction.reshape(B, C, HW)                    # no transpose
    label_cm = label.reshape(B, 1, HW).astype(jnp.int32)
    w2d = weight.reshape(C, 1).astype(jnp.float32)

    # Only raise the scoped-VMEM limit when the estimate would exceed v5e's
    # 16 MiB default (keeps v7x's 64 MiB physical budget untouched otherwise).
    bytes_per_pix = (2 * C * pred_cm.dtype.itemsize       # logits, dbl-buffered
                     + 2 * C * jnp.dtype(wp_dtype).itemsize  # wp, dbl-buffered
                     + 2 * 4                               # labels
                     + C * 4                               # counts scratch
                     + 4)                                  # sq scratch
    est_vmem = tile * bytes_per_pix + (1 << 20)
    compiler_kwargs = dict(
        dimension_semantics=("parallel", "parallel", "arbitrary"))
    if est_vmem > 12 * 1024 * 1024:
        compiler_kwargs["vmem_limit_bytes"] = min(est_vmem + (4 << 20),
                                                  48 * 1024 * 1024)

    def pix_map(b, s, t):
        return (b, 0, s * ntps + t)

    def part_map(b, s, t):
        return (b * num_shards + s, 0, 0)

    wp_cm, counts_bs, sq_bs = pl.pallas_call(
        _calib_kernel,
        out_shape=(
            jax.ShapeDtypeStruct((B, C, HW), wp_dtype),
            jax.ShapeDtypeStruct((B * num_shards, C, 1), jnp.float32),
            jax.ShapeDtypeStruct((B * num_shards, 1, 1), jnp.float32),
        ),
        grid_spec=pltpu.PrefetchScalarGridSpec(
            num_scalar_prefetch=0,
            grid=(B, num_shards, ntps),
            in_specs=[
                pl.BlockSpec((C, 1), lambda b, s, t: (0, 0)),       # weight
                pl.BlockSpec((None, C, tile), pix_map),             # logits
                pl.BlockSpec((None, 1, tile), pix_map),             # labels
            ],
            out_specs=[
                pl.BlockSpec((None, C, tile), pix_map),             # wp
                pl.BlockSpec((None, C, 1), part_map),               # counts
                pl.BlockSpec((None, 1, 1), part_map),               # sq sum
            ],
            scratch_shapes=[
                pltpu.VMEM((C, tile), jnp.float32),   # counts lane-partials
                pltpu.VMEM((1, tile), jnp.float32),   # sq-error lane-partials
            ],
        ),
        compiler_params=pltpu.CompilerParams(**compiler_kwargs),
    )(w2d, pred_cm, label_cm)

    # --- tiny 19-element glue (prior comparison + scalar combination) ---
    prior_ratio = _PRIOR / jnp.sum(_PRIOR)
    size_all = jnp.sum(counts_bs[:, :, 0], axis=0)            # (C,)
    ratio_all = size_all / jnp.sum(size_all)                  # NaN if no pixel
    loss = jnp.sum((ratio_all - prior_ratio) ** 2)            # >0.9 (as in spec)
    mse_loss = jnp.sum(sq_bs) / N                             # mean over B*H*W
    all_loss = loss + 0.05 * mse_loss

    weighted_prediction = wp_cm.reshape(B, C, H, W)           # no transpose
    return all_loss, weighted_prediction


def _reference(prediction, label, weight):
    """Pure-JAX reference mirroring the PyTorch forward (float32)."""
    prior = _PRIOR / jnp.sum(_PRIOR)
    sm = jax.nn.softmax(prediction.astype(jnp.float32), axis=1)        # (B,C,H,W)
    wp = sm * weight[None, :, None, None]
    wp = wp / jnp.sum(wp, axis=1, keepdims=True)
    size_all = jnp.sum((wp > THRESHOLD).astype(jnp.float32), axis=(0, 2, 3))
    ratio_all = size_all / jnp.sum(size_all)
    loss = jnp.sum((ratio_all - prior) ** 2)
    one_hot = jax.nn.one_hot(label, CLASSES, dtype=jnp.float32)        # 255 -> 0
    one_hot = jnp.transpose(one_hot, (0, 3, 1, 2))
    sq = jnp.sum((wp - one_hot) ** 2, axis=1)                          # (B,H,W)
    sq = jnp.where(label == 255, 0.0, sq)
    mse = jnp.mean(sq)
    return loss + 0.05 * mse, wp


if __name__ == "__main__":
    key = jax.random.PRNGKey(0)
    B, C, H, W = 2, CLASSES, 16, 16

    # Deterministic "parameters" (classes == 19 branch of __init__).
    weight = 0.5 * jnp.ones((C,), jnp.float32)
    bias = 0.01 * jnp.ones((C,), jnp.float32)   # unused in forward (as in spec)

    k1, k2, k3 = jax.random.split(key, 3)
    # Scale logits so some pixels are confidently classified (> 0.9 softmax).
    prediction = 6.0 * jax.random.normal(k1, (B, C, H, W), jnp.float32)
    label = jax.random.randint(k2, (B, H, W), 0, CLASSES).astype(jnp.int32)
    # Sprinkle some ignore pixels (255).
    ignore_mask = jax.random.uniform(k3, (B, H, W)) < 0.1
    label = jnp.where(ignore_mask, 255, label)

    all_loss, wp = calib_forward(prediction, label, weight)
    jax.block_until_ready((all_loss, wp))

    ref_loss, ref_wp = _reference(prediction, label, weight)
    # wp is emitted as bf16 and normalized with an approximate reciprocal,
    # so compare at bf16-ulp-scale tolerance; the loss is built from exact
    # f32 threshold counts plus an approx-recip-influenced mse term.
    assert jnp.allclose(wp.astype(jnp.float32), ref_wp, atol=1e-2, rtol=1e-2), \
        "weighted prediction mismatch"
    assert jnp.allclose(all_loss, ref_loss, atol=5e-3, rtol=5e-3), \
        "loss mismatch"

    print("KERNEL_OK")
</pallas_src>

<mosaic_0001>
module attributes {stable_mosaic.version = 11 : i64} {
  func.func @_calib_kernel(%arg0: i32, %arg1: i32, %arg2: i32, %arg3: memref<19x1xf32, #tpu.memory_space<vmem>>, %arg4: memref<1x19x256xf32, #tpu.memory_space<vmem>>, %arg5: memref<1x1x256xi32, #tpu.memory_space<vmem>>, %arg6: memref<1x19x256xbf16, #tpu.memory_space<vmem>>, %arg7: memref<1x19x1xf32, #tpu.memory_space<vmem>>, %arg8: memref<1x1x1xf32, #tpu.memory_space<vmem>>, %arg9: memref<19x256xf32, #tpu.memory_space<vmem>>, %arg10: memref<1x256xf32, #tpu.memory_space<vmem>>) attributes {dimension_semantics = [#tpu.dimension_semantics<parallel>, #tpu.dimension_semantics<parallel>, #tpu.dimension_semantics<arbitrary>], iteration_bounds = array<i64: 2, 1, 1>, scalar_prefetch = 0 : i64, scratch_operands = 2 : i64, tpu.core_type = #tpu.core_type<tc>, window_params = [{pipeline_mode = #tpu.pipeline_mode<synchronous>, transform_indices = @transform_0, window_bounds = array<i64: 19, 1>}, {transform_indices = @transform_1, window_bounds = array<i64: 1, 19, 256>}, {transform_indices = @transform_2, window_bounds = array<i64: 1, 1, 256>}, {transform_indices = @transform_3, window_bounds = array<i64: 1, 19, 256>}, {transform_indices = @transform_4, window_bounds = array<i64: 1, 19, 1>}, {transform_indices = @transform_5, window_bounds = array<i64: 1, 1, 1>}]} {
    %c0_i32 = arith.constant 0 : i32
    %0 = arith.cmpi eq, %arg2, %c0_i32 : i32
    %1 = arith.extui %0 : i1 to i32
    %c0_i32_0 = arith.constant 0 : i32
    %2 = arith.cmpi ne, %1, %c0_i32_0 : i32
    scf.if %2 {
      %cst_25 = arith.constant 0.000000e+00 : f32
      %52 = vector.broadcast %cst_25 : f32 to vector<19x256xf32>
      %c0_26 = arith.constant 0 : index
      %c0_27 = arith.constant 0 : index
      %53 = vector.load %arg9[%c0_26, %c0_27] : memref<19x256xf32, #tpu.memory_space<vmem>>, vector<19x256xf32>
      tpu.vector_store %arg9[%c0_26, %c0_27], %52 {strides = array<i32>} : memref<19x256xf32, #tpu.memory_space<vmem>>, vector<19x256xf32>,
      %cst_28 = arith.constant 0.000000e+00 : f32
      %54 = vector.broadcast %cst_28 : f32 to vector<1x256xf32>
      %c0_29 = arith.constant 0 : index
      %c0_30 = arith.constant 0 : index
      %55 = vector.load %arg10[%c0_29, %c0_30] : memref<1x256xf32, #tpu.memory_space<vmem>>, vector<1x256xf32>
      tpu.vector_store %arg10[%c0_29, %c0_30], %54 {strides = array<i32>} : memref<1x256xf32, #tpu.memory_space<vmem>>, vector<1x256xf32>,
    } else {
    }
    %c0 = arith.constant 0 : index
    %c0_1 = arith.constant 0 : index
    %c0_2 = arith.constant 0 : index
    %3 = vector.load %arg4[%c0, %c0_1, %c0_2] : memref<1x19x256xf32, #tpu.memory_space<vmem>>, vector<1x19x256xf32>
    %4 = vector.shape_cast %3 : vector<1x19x256xf32> to vector<19x256xf32>
    %c0_3 = arith.constant 0 : index
    %c0_4 = arith.constant 0 : index
    %5 = vector.load %arg3[%c0_3, %c0_4] : memref<19x1xf32, #tpu.memory_space<vmem>>, vector<19x1xf32>
    %cst = arith.constant dense<0xFF800000> : vector<256xf32>
    %6 = vector.multi_reduction <maximumf>, %4, %cst [0] : vector<19x256xf32> to vector<256xf32>
    %7 = vector.shape_cast %6 : vector<256xf32> to vector<1x256xf32>
    %8 = vector.broadcast %7 : vector<1x256xf32> to vector<19x256xf32>
    %9 = arith.subf %4, %8 : vector<19x256xf32>
    %10 = math.exp %9 : vector<19x256xf32>
    %11 = vector.broadcast %5 : vector<19x1xf32> to vector<19x256xf32>
    %12 = arith.mulf %10, %11 : vector<19x256xf32>
    %cst_5 = arith.constant dense<0.000000e+00> : vector<256xf32>
    %13 = vector.multi_reduction <add>, %12, %cst_5 [0] : vector<19x256xf32> to vector<256xf32>
    %14 = vector.shape_cast %13 : vector<256xf32> to vector<1x256xf32>
    %c0_6 = arith.constant 0 : index
    %c0_7 = arith.constant 0 : index
    %15 = vector.load %arg9[%c0_6, %c0_7] : memref<19x256xf32, #tpu.memory_space<vmem>>, vector<19x256xf32>
    %cst_8 = arith.constant 0.899999976 : f32
    %16 = vector.broadcast %cst_8 : f32 to vector<1x256xf32>
    %17 = arith.mulf %16, %14 : vector<1x256xf32>
    %18 = vector.broadcast %17 : vector<1x256xf32> to vector<19x256xf32>
    %19 = arith.cmpf ogt, %12, %18 : vector<19x256xf32>
    %20 = arith.extui %19 : vector<19x256xi1> to vector<19x256xi32>
    %21 = arith.sitofp %20 : vector<19x256xi32> to vector<19x256xf32>
    %22 = arith.addf %15, %21 : vector<19x256xf32>
    %c0_9 = arith.constant 0 : index
    %c0_10 = arith.constant 0 : index
    %23 = vector.load %arg9[%c0_9, %c0_10] : memref<19x256xf32, #tpu.memory_space<vmem>>, vector<19x256xf32>
    tpu.vector_store %arg9[%c0_9, %c0_10], %22 {strides = array<i32>} : memref<19x256xf32, #tpu.memory_space<vmem>>, vector<19x256xf32>,
    %24 = tpu.reciprocal %14 {approx = true} : vector<1x256xf32> -> vector<1x256xf32>
    %25 = vector.broadcast %24 : vector<1x256xf32> to vector<19x256xf32>
    %26 = arith.mulf %12, %25 : vector<19x256xf32>
    %27 = arith.truncf %26 : vector<19x256xf32> to vector<19x256xbf16>
    %c0_11 = arith.constant 0 : index
    %c0_12 = arith.constant 0 : index
    %c0_13 = arith.constant 0 : index
    %28 = vector.load %arg6[%c0_11, %c0_12, %c0_13] : memref<1x19x256xbf16, #tpu.memory_space<vmem>>, vector<1x19x256xbf16>
    %29 = vector.shape_cast %28 : vector<1x19x256xbf16> to vector<19x256xbf16>
    %30 = vector.shape_cast %27 : vector<19x256xbf16> to vector<1x19x256xbf16>
    tpu.vector_store %arg6[%c0_11, %c0_12, %c0_13], %30 {strides = array<i32>} : memref<1x19x256xbf16, #tpu.memory_space<vmem>>, vector<1x19x256xbf16>,
    %c0_14 = arith.constant 0 : index
    %c0_15 = arith.constant 0 : index
    %c0_16 = arith.constant 0 : index
    %31 = vector.load %arg5[%c0_14, %c0_15, %c0_16] : memref<1x1x256xi32, #tpu.memory_space<vmem>>, vector<1x1x256xi32>
    %32 = vector.shape_cast %31 : vector<1x1x256xi32> to vector<1x256xi32>
    %33 = tpu.iota {dimensions = array<i32: 0>} : vector<19x256xi32>
    %34 = vector.broadcast %32 : vector<1x256xi32> to vector<19x256xi32>
    %35 = arith.cmpi eq, %34, %33 : vector<19x256xi32>
    %36 = arith.extui %35 : vector<19x256xi1> to vector<19x256xi32>
    %37 = arith.sitofp %36 : vector<19x256xi32> to vector<19x256xf32>
    %38 = arith.subf %26, %37 : vector<19x256xf32>
    %39 = arith.mulf %38, %38 : vector<19x256xf32>
    %cst_17 = arith.constant dense<0.000000e+00> : vector<256xf32>
    %40 = vector.multi_reduction <add>, %39, %cst_17 [0] : vector<19x256xf32> to vector<256xf32>
    %41 = vector.shape_cast %40 : vector<256xf32> to vector<1x256xf32>
    %c0_18 = arith.constant 0 : index
    %c0_19 = arith.constant 0 : index
    %42 = vector.load %arg10[%c0_18, %c0_19] : memref<1x256xf32, #tpu.memory_space<vmem>>, vector<1x256xf32>
    %c255_i32 = arith.constant 255 : i32
    %43 = vector.broadcast %c255_i32 : i32 to vector<1x256xi32>
    %44 = arith.cmpi eq, %32, %43 : vector<1x256xi32>
    %cst_20 = arith.constant 0.000000e+00 : f32
    %45 = vector.broadcast %cst_20 : f32 to vector<1x256xf32>
    %46 = arith.select %44, %45, %41 : vector<1x256xi1>, vector<1x256xf32>
    %47 = arith.addf %42, %46 : vector<1x256xf32>
    %c0_21 = arith.constant 0 : index
    %c0_22 = arith.constant 0 : index
    %48 = vector.load %arg10[%c0_21, %c0_22] : memref<1x256xf32, #tpu.memory_space<vmem>>, vector<1x256xf32>
    tpu.vector_store %arg10[%c0_21, %c0_22], %47 {strides = array<i32>} : memref<1x256xf32, #tpu.memory_space<vmem>>, vector<1x256xf32>,
    %c0_i32_23 = arith.constant 0 : i32
    %49 = arith.cmpi eq, %arg2, %c0_i32_23 : i32
    %50 = arith.extui %49 : i1 to i32
    %c0_i32_24 = arith.constant 0 : i32
    %51 = arith.cmpi ne, %50, %c0_i32_24 : i32
    scf.if %51 {
      %c0_25 = arith.constant 0 : index
      %c0_26 = arith.constant 0 : index
      %52 = vector.load %arg9[%c0_25, %c0_26] : memref<19x256xf32, #tpu.memory_space<vmem>>, vector<19x256xf32>
      %cst_27 = arith.constant dense<0.000000e+00> : vector<19xf32>
      %53 = vector.multi_reduction <add>, %52, %cst_27 [1] : vector<19x256xf32> to vector<19xf32>
      %54 = vector.shape_cast %53 : vector<19xf32> to vector<19x1xf32>
      %c0_28 = arith.constant 0 : index
      %c0_29 = arith.constant 0 : index
      %c0_30 = arith.constant 0 : index
      %55 = vector.load %arg7[%c0_28, %c0_29, %c0_30] : memref<1x19x1xf32, #tpu.memory_space<vmem>>, vector<1x19x1xf32>
      %56 = vector.shape_cast %55 : vector<1x19x1xf32> to vector<19x1xf32>
      %57 = vector.shape_cast %54 : vector<19x1xf32> to vector<1x19x1xf32>
      tpu.vector_store %arg7[%c0_28, %c0_29, %c0_30], %57 {strides = array<i32>} : memref<1x19x1xf32, #tpu.memory_space<vmem>>, vector<1x19x1xf32>,
      %c0_31 = arith.constant 0 : index
      %c0_32 = arith.constant 0 : index
      %58 = vector.load %arg10[%c0_31, %c0_32] : memref<1x256xf32, #tpu.memory_space<vmem>>, vector<1x256xf32>
      %cst_33 = arith.constant dense<0.000000e+00> : vector<1xf32>
      %59 = vector.multi_reduction <add>, %58, %cst_33 [1] : vector<1x256xf32> to vector<1xf32>
      %60 = vector.shape_cast %59 : vector<1xf32> to vector<1x1xf32>
      %c0_34 = arith.constant 0 : index
      %c0_35 = arith.constant 0 : index
      %c0_36 = arith.constant 0 : index
      %61 = vector.load %arg8[%c0_34, %c0_35, %c0_36] : memref<1x1x1xf32, #tpu.memory_space<vmem>>, vector<1x1x1xf32>
      %62 = vector.shape_cast %61 : vector<1x1x1xf32> to vector<1x1xf32>
      %63 = vector.shape_cast %60 : vector<1x1xf32> to vector<1x1x1xf32>
      tpu.vector_store %arg8[%c0_34, %c0_35, %c0_36], %63 {strides = array<i32>} : memref<1x1x1xf32, #tpu.memory_space<vmem>>, vector<1x1x1xf32>,
    } else {
    }
    return
  }
  func.func @transform_0(%arg0: i32, %arg1: i32, %arg2: i32) -> (i32, i32) {
    %c0_i32 = arith.constant 0 : i32
    %c0_i32_0 = arith.constant 0 : i32
    %c0_i32_1 = arith.constant 0 : i32
    return %c0_i32, %c0_i32_0 : i32, i32
  }
  func.func @transform_1(%arg0: i32, %arg1: i32, %arg2: i32) -> (i32, i32, i32) {
    %c1_i32 = arith.constant 1 : i32
    %0 = arith.muli %arg1, %c1_i32 : i32
    %1 = arith.addi %0, %arg2 : i32
    %c0_i32 = arith.constant 0 : i32
    %c0_i32_0 = arith.constant 0 : i32
    return %arg0, %c0_i32, %1 : i32, i32, i32
  }
  func.func @transform_2(%arg0: i32, %arg1: i32, %arg2: i32) -> (i32, i32, i32) {
    %c1_i32 = arith.constant 1 : i32
    %0 = arith.muli %arg1, %c1_i32 : i32
    %1 = arith.addi %0, %arg2 : i32
    %c0_i32 = arith.constant 0 : i32
    %c0_i32_0 = arith.constant 0 : i32
    return %arg0, %c0_i32, %1 : i32, i32, i32
  }
  func.func @transform_3(%arg0: i32, %arg1: i32, %arg2: i32) -> (i32, i32, i32) {
    %c1_i32 = arith.constant 1 : i32
    %0 = arith.muli %arg1, %c1_i32 : i32
    %1 = arith.addi %0, %arg2 : i32
    %c0_i32 = arith.constant 0 : i32
    %c0_i32_0 = arith.constant 0 : i32
    return %arg0, %c0_i32, %1 : i32, i32, i32
  }
  func.func @transform_4(%arg0: i32, %arg1: i32, %arg2: i32) -> (i32, i32, i32) {
    %c1_i32 = arith.constant 1 : i32
    %0 = arith.muli %arg0, %c1_i32 : i32
    %1 = arith.addi %0, %arg1 : i32
    %c0_i32 = arith.constant 0 : i32
    %c0_i32_0 = arith.constant 0 : i32
    %c0_i32_1 = arith.constant 0 : i32
    return %1, %c0_i32, %c0_i32_0 : i32, i32, i32
  }
  func.func @transform_5(%arg0: i32, %arg1: i32, %arg2: i32) -> (i32, i32, i32) {
    %c1_i32 = arith.constant 1 : i32
    %0 = arith.muli %arg0, %c1_i32 : i32
    %1 = arith.addi %0, %arg1 : i32
    %c0_i32 = arith.constant 0 : i32
    %c0_i32_0 = arith.constant 0 : i32
    %c0_i32_1 = arith.constant 0 : i32
    return %1, %c0_i32, %c0_i32_0 : i32, i32, i32
  }
}

</mosaic_0001>

<bundles_post_ra>
// kernel: tpu_custom_call.1
= control target key start
LH: loop header
LB: loop body
LE: loop exit
PB: predicated region body
PF: predicated region fallthrough
CT: control target
= control target key end

     0   :  { %s920_s18 = smov 0   ;;  %s922_s19 = smov 0   ;;  %s1071_s0 = inlined_call_operand.vmem [shape: f32[19,1], index: 0, kind: input, shape index: {}]   ;;  %s1072_s1 = inlined_call_operand.vmem [shape: f32[2,19,256], index: 1, kind: input, shape index: {}]   ;;  %s1073_s2 = inlined_call_operand.vmem [shape: s32[2,1,256], index: 2, kind: input, shape index: {}]   ;;  %s1074_s3 = inlined_call_operand.vmem [shape: bf16[2,19,256], index: 3, kind: output, shape index: {0}]   ;;  %s1075_s4 = inlined_call_operand.vmem [shape: f32[2,19,1], index: 4, kind: output, shape index: {1}]   ;;  %s1076_s5 = inlined_call_operand.vmem [shape: f32[2,1,1], index: 5, kind: output, shape index: {2}]  }
   0x1   :  { %s924_s20 = smov 0  }
   0x2 LB: > { %s35_s21 = sadd.s32 1, %s882_s19  ;;  %p799_p0 = scmp.ge.s32.totalorder %s886_s20, 1  ;;  %s886_s20 = sphi %s924_s20, %s16_s20   ;;  %s882_s19 = sphi %s922_s19, %s1084_s19   ;;  %s878_s18 = sphi %s920_s18, %s1083_s18  }
   0x3   : > { %p37_p1 = scmp.ge.s32.totalorder %s35_s21, 2  ;;  %p250_p2 = scmp.lt.s32.totalorder %s886_s20, 3 }
   0x5   : > { %s1086_s21 = smov (%p37_p1, %s35_s21), 0  ;;  %p251_p3 = pnand %p799_p0, %p250_p2 }
   0x6   : > { %p309_p4 = scmp.lt.s32.totalorder (!%p251_p3), %s878_s18, 1 }
   0x7   : > { %254 = sbr.rel (%p251_p3) target bundleno = 321 (0x141), region = 32 }
   0xc   : > { %v375_v0 = vld [vmem:[%s1071_s0] sm:$0xff]  ;;  %v377_v1 = vld [vmem:[%s1071_s0 + $0x10] sm:$0x7]  ;;  %v888_v2 = vmov 0   ;;  %v376_v3 = vld [vmem:[%s1071_s0 + $0x8] sm:$0xff]  ;;  %s1088_s18 = smov (!%p309_p4, %s878_s18), 1  ;;  %v364_v60 = vlaneseq }
   0xd   : > { %846 = vset.pattern.permute.xlu0 %v888_v2  ;;  %847 = vset.pattern.permute.xlu1 %v888_v2  ;;  %s818_s28 = smul.u32 48, %s1088_s18  ;;  %vm378_vm0 = vcmask 1042432   ;;  %v889_v25 = vmov 0.0   ;;  %s801_s7 = sshll.u32 %s1088_s18, 1  ;;  %vm505_vm8 = vcmask 1041408   ;;  %vm508_vm10 = vcmask 1045508  }
   0xe   : > { %417 = vperm.xlu0 %846, %v375_v0   ;;  %427 = vperm.xlu1 %847, %v377_v1   ;;  %362 = vst [vmem:[#allocation2 + $0x18] sm:$0x7] %v889_v25  ;;  %s327_s10 = scalar_lea.vmem %s1073_s2, %s801_s7  ;;  %v517_v2 = vshrl.u32 %v364_v60, 7  ;;  %vm985_vm1 = vcmp.lt.s32.totalorder %v364_v60, 256  ;;  %vm506_vm9 = vsmask.f32 1280  ;;  %s352_s24 = scalar_lea.vmem %s1076_s5, %s1088_s18 }
   0xf   : > { %s316_s6 = scalar_lea.vmem %s1072_s1, %s818_s28  ;;  %363 = vst [vmem:[#allocation2 + $0x20] sm:$0x7] %v889_v25  ;;  %v981_v1 = vld [vmem:[%s327_s10] sm:$0x3]  ;;  %vm509_vm11 = vsmask.f32 5376 }
  0x10   : > { %v373_v4 = vld [vmem:[%s316_s6 + $0x20] sm:$0x7]  ;;  %v374_v6 = vld [vmem:[%s316_s6 + $0x28] sm:$0x7]  ;;  %v371_v11 = vld [vmem:[%s316_s6 + $0x10] sm:$0xff]  ;;  %s819_s11 = smul.u32 24, %s1088_s18 }
  0x11   : > { %v369_v5 = vld [vmem:[%s316_s6] sm:$0xff]  ;;  %v379_v7 = vsel %vm378_vm0, %v373_v4, -inf  ;;  %v370_v8 = vld [vmem:[%s316_s6 + $0x8] sm:$0xff]  ;;  %v388_v10 = vsel %vm378_vm0, %v374_v6, -inf  ;;  %v372_v13 = vld [vmem:[%s316_s6 + $0x18] sm:$0xff] }
  0x12   : > { %v380_v9 = vmax.f32 %v369_v5, %v379_v7  ;;  %v389_v12 = vmax.f32 %v370_v8, %v388_v10  ;;  %v518_v10 = vadd.s32 8, %v517_v2  ;;  %368 = vst.msk [vmem:[#allocation3] sm:$0x3] %vm985_vm1, %v889_v25  ;;  %s1027_s14 = scalar_lea.vmem %s1074_s3, %s819_s11  ;;  %s347_s17 = scalar_lea.vmem %s1075_s4, %s819_s11 }
  0x14   : > { %v381_v14 = vmax.f32 %v380_v9, %v371_v11  ;;  %v390_v15 = vmax.f32 %v389_v12, %v372_v13 }
  0x16   : > { %422 = vperm.xlu0 %846, %v376_v3   ;;  %v382_v16 = vrot.slane %v381_v14, 4  ;;  %v391_v17 = vrot.slane %v390_v15, 4 }
  0x18   : > { %v383_v18 = vmax.f32 %v381_v14, %v382_v16  ;;  %v392_v19 = vmax.f32 %v390_v15, %v391_v17 }
  0x1a   : > { %v384_v20 = vrot.slane %v383_v18, 2  ;;  %v393_v21 = vrot.slane %v392_v19, 2 }
  0x1c   : > { %v385_v22 = vmax.f32 %v383_v18, %v384_v20  ;;  %v394_v23 = vmax.f32 %v392_v19, %v393_v21 }
  0x1e   : > { %v386_v24 = vrot.slane %v385_v22, 1  ;;  %v395_v26 = vrot.slane %v394_v23, 1 }
  0x20   : > { %v387_v27 = vmax.f32 %v385_v22, %v386_v24  ;;  %v396_v28 = vmax.f32 %v394_v23, %v395_v26  ;;  %v458_v24 = vld [vmem:[#allocation2 + $0x18] sm:$0x7]  ;;  %v459_v26 = vld [vmem:[#allocation2 + $0x20] sm:$0x7] }
  0x22   : > { %v397_v29 = vsub.f32 %v369_v5, %v387_v27  ;;  %v401_v30 = vsub.f32 %v373_v4, %v387_v27  ;;  %v402_v31 = vsub.f32 %v374_v6, %v396_v28  ;;  %v398_v32 = vsub.f32 %v370_v8, %v396_v28 }
  0x23   : > { %v399_v34 = vsub.f32 %v371_v11, %v387_v27  ;;  %v400_v35 = vsub.f32 %v372_v13, %v396_v28  ;;  %v520_v5 = vperm.slane %v981_v1, 0  ;;  %v521_v6 = vperm.slane %v981_v1, 1 }
  0x24   : > { %v403_v33 = vmul.f32 1.442695, %v397_v29  ;;  %v411_v36 = vmul.f32 1.442695, %v401_v30  ;;  %v413_v37 = vmul.f32 1.442695, %v402_v31 }
  0x25   : > { %v405_v38 = vmul.f32 1.442695, %v398_v32  ;;  %v407_v39 = vmul.f32 1.442695, %v399_v34  ;;  %v409_v40 = vmul.f32 1.442695, %v400_v35  ;;  %vm522_vm2 = vcmp.eq.s32.totalorder %v520_v5, %v517_v2 }
  0x26   : > { %848 = vpow2.f32 %v403_v33  ;;  %v519_v13 = vadd.s32 16, %v517_v2  ;;  %vm523_vm3 = vcmp.eq.s32.totalorder %v521_v6, %v517_v2  ;;  %vm524_vm4 = vcmp.eq.s32.totalorder %v520_v5, %v518_v10 }
  0x27   : > { %850 = vpow2.f32 %v411_v36  ;;  %vm525_vm5 = vcmp.eq.s32.totalorder %v521_v6, %v518_v10  ;;  %v810_v18 = vsel %vm522_vm2, 1.0, %v889_v25  ;;  %v811_v19 = vsel %vm523_vm3, 1.0, %v889_v25 }
  0x28   : > { %852 = vpow2.f32 %v413_v37  ;;  %vm526_vm6 = vcmp.eq.s32.totalorder %v520_v5, %v519_v13  ;;  %vm527_vm7 = vcmp.eq.s32.totalorder %v521_v6, %v519_v13  ;;  %v812_v20 = vsel %vm524_vm4, 1.0, %v889_v25  ;;  %vm1015_vm4 = vmand %vm505_vm8, %vm506_vm9 }
  0x29   : > { %854 = vpow2.f32 %v405_v38  ;;  %v813_v21 = vsel %vm525_vm5, 1.0, %v889_v25  ;;  %v814_v36 = vsel %vm526_vm6, 1.0, %v889_v25  ;;  %v815_v37 = vsel %vm527_vm7, 1.0, %v889_v25  ;;  %vm1031_vm5 = vmand %vm508_vm10, %vm509_vm11 }
  0x2a   : > { %856 = vpow2.f32 %v407_v39  ;;  %vm511_vm6 = vmor %vm1031_vm5, %vm1015_vm4  ;;  %vm575_vm7 = vcmask 1040384   ;;  %vm571_vm8 = vcmp.eq.s32.totalorder %v981_v1, 255  ;;  %vm608_vm9 = vcmask 2048  }
  0x2b   : > { %858 = vpow2.f32 %v409_v40 }
  0x2c   : > { %v849_v42 = vpop.eup %848 }
  0x2d   : > { %v851_v43 = vpop.eup %850 }
  0x2e   : > { %v853_v44 = vpop.eup %852 }
  0x2f   : > { %v855_v46 = vpop.eup %854 }
  0x30   : > { %v857_v47 = vpop.eup %856 }
  0x31   : > { %v859_v48 = vpop.eup %858 }
  0x80   : > { %v418_v41 = vpop.permute.xlu0 %417  ;;  %v428_v45 = vpop.permute.xlu1 %427 }
  0x81   : > { %v957_v49 = vmul.f32 %v851_v43, %v428_v45  ;;  %v959_v50 = vmul.f32 %v853_v44, %v428_v45  ;;  %v961_v52 = vmul.f32 %v849_v42, %v418_v41  ;;  %v963_v53 = vmul.f32 %v855_v46, %v418_v41 }
  0x83   : > { %v437_v56 = vsel %vm378_vm0, %v957_v49, 0.0  ;;  %v446_v57 = vsel %vm378_vm0, %v959_v50, 0.0 }
  0x88   : > { %v423_v51 = vpop.permute.xlu0 %422 }
  0x89   : > { %v965_v54 = vmul.f32 %v857_v47, %v423_v51  ;;  %v967_v55 = vmul.f32 %v859_v48, %v423_v51 }
  0x8b   : > { %v436_v58 = vadd.f32 %v965_v54, %v961_v52  ;;  %v445_v59 = vadd.f32 %v967_v55, %v963_v53 }
  0x8d   : > { %v438_v61 = vadd.f32 %v437_v56, %v436_v58  ;;  %v447_v62 = vadd.f32 %v446_v57, %v445_v59  ;;  %v512_v58 = vld [vmem:[%s1027_s14 + $0x10] sm:$0x33] }
  0x8f   : > { %v439_v63 = vrot.slane %v438_v61, 4  ;;  %v448_v0 = vrot.slane %v447_v62, 4 }
  0x91   : > { %v440_v3 = vadd.f32 %v439_v63, %v438_v61  ;;  %v449_v4 = vadd.f32 %v448_v0, %v447_v62 }
  0x93   : > { %v441_v8 = vrot.slane %v440_v3, 2  ;;  %v450_v9 = vrot.slane %v449_v4, 2 }
  0x95   : > { %v442_v11 = vadd.f32 %v441_v8, %v440_v3  ;;  %v451_v12 = vadd.f32 %v450_v9, %v449_v4 }
  0x97   : > { %v443_v14 = vrot.slane %v442_v11, 1  ;;  %v452_v15 = vrot.slane %v451_v12, 1 }
  0x99   : > { %v444_v16 = vadd.f32 %v443_v14, %v442_v11  ;;  %v453_v17 = vadd.f32 %v452_v15, %v451_v12 }
  0x9b   : > { %v460_v22 = vmul.f32 0.9, %v444_v16  ;;  %v461_v23 = vmul.f32 0.9, %v453_v17  ;;  %860 = vrcp.f32 %v444_v16 }
  0x9c   : > { %862 = vrcp.f32 %v453_v17 }
  0x9d   : > { %vm462_vm12 = vcmp.gt.f32.partialorder %v961_v52, %v460_v22  ;;  %vm463_vm13 = vcmp.gt.f32.partialorder %v963_v53, %v461_v23  ;;  %vm464_vm14 = vcmp.gt.f32.partialorder %v965_v54, %v460_v22  ;;  %vm465_vm15 = vcmp.gt.f32.partialorder %v967_v55, %v461_v23 }
  0x9e   : > { %vm466_vm2 = vcmp.gt.f32.partialorder %v957_v49, %v460_v22  ;;  %vm467_vm3 = vcmp.gt.f32.partialorder %v959_v50, %v461_v23  ;;  %v804_v27 = vsel %vm462_vm12, 1.0, %v889_v25  ;;  %v805_v28 = vsel %vm463_vm13, 1.0, %v889_v25 }
  0x9f   : > { %v806_v29 = vsel %vm464_vm14, 1.0, %v889_v25  ;;  %v807_v30 = vsel %vm465_vm15, 1.0, %v889_v25  ;;  %v808_v31 = vsel %vm466_vm2, 1.0, %v889_v25  ;;  %v809_v32 = vsel %vm467_vm3, 1.0, %v889_v25 }
  0xa0   : > { %v484_v34 = vadd.f32 %v808_v31, %v458_v24  ;;  %v485_v35 = vadd.f32 %v809_v32, %v459_v26  ;;  %v597_v43 = vadd.f32 %v807_v30, %v806_v29  ;;  %v594_v47 = vadd.f32 %v805_v28, %v804_v27  ;;  %v570_v28 = vld [vmem:[#allocation3] sm:$0x3] }
  0xa1   : > { %v861_v33 = vpop.eup %860 }
  0xa2   : > { %v863_v39 = vpop.eup %862  ;;  %v494_v40 = vmul.f32 %v861_v33, %v961_v52  ;;  %v496_v41 = vmul.f32 %v861_v33, %v965_v54  ;;  %v498_v42 = vmul.f32 %v861_v33, %v957_v49  ;;  %598 = vadd.xlane.f32.xlu2 %v597_v43  ;;  %490 = vst [vmem:[#allocation2 + $0x18] sm:$0x7] %v484_v34 }
  0xa3   : > { %v495_v44 = vmul.f32 %v863_v39, %v963_v53  ;;  %v497_v45 = vmul.f32 %v863_v39, %v967_v55  ;;  %v499_v46 = vmul.f32 %v863_v39, %v959_v50  ;;  %595 = vadd.xlane.f32.xlu1 %v594_v47  ;;  %491 = vst [vmem:[#allocation2 + $0x20] sm:$0x7] %v485_v35 }
  0xa4   : > { %v540_v48 = vsub.f32 %v494_v40, %v810_v18  ;;  %v542_v49 = vsub.f32 %v496_v41, %v812_v20  ;;  %v544_v51 = vsub.f32 %v498_v42, %v814_v36 }
  0xa5   : > { %v502_v52 = vpack.c.bf16 %v499_v46, %v498_v42  ;;  %v541_v54 = vsub.f32 %v495_v44, %v811_v19  ;;  %v543_v56 = vsub.f32 %v497_v45, %v813_v21  ;;  %v545_v57 = vsub.f32 %v499_v46, %v815_v37 }
  0xa6   : > { %v546_v53 = vmul.f32 %v540_v48, %v540_v48  ;;  %v548_v55 = vmul.f32 %v542_v49, %v542_v49  ;;  %v550_v50 = vmul.f32 %v544_v51, %v544_v51  ;;  %v500_v62 = vpack.c.bf16 %v495_v44, %v494_v40 }
  0xa7   : > { %v547_v59 = vmul.f32 %v541_v54, %v541_v54  ;;  %v549_v60 = vmul.f32 %v543_v56, %v543_v56  ;;  %v551_v61 = vmul.f32 %v545_v57, %v545_v57  ;;  %v501_v2 = vpack.c.bf16 %v497_v45, %v496_v41 }
  0xa8   : > { %v552_v63 = vadd.f32 %v548_v55, %v546_v53  ;;  %v553_v0 = vsel %vm378_vm0, %v550_v50, 0.0  ;;  %v513_v3 = vsel %vm511_vm6, %v502_v52, %v512_v58  ;;  %503 = vst [vmem:[%s1027_s14] sm:$0xff] %v500_v62 }
  0xa9   : > { %v561_v4 = vadd.f32 %v549_v60, %v547_v59  ;;  %v562_v5 = vsel %vm378_vm0, %v551_v61, 0.0  ;;  %504 = vst [vmem:[%s1027_s14 + $0x8] sm:$0xff] %v501_v2  ;;  %v592_v11 = vld [vmem:[#allocation2 + $0x18] sm:$0x7] }
  0xaa   : > { %v554_v6 = vadd.f32 %v553_v0, %v552_v63  ;;  %514 = vst [vmem:[%s1027_s14 + $0x10] sm:$0x33] %v513_v3  ;;  %v593_v13 = vld [vmem:[#allocation2 + $0x20] sm:$0x7]  ;;  %v600_v14 = vsel %vm378_vm0, %v592_v11, 0.0 }
  0xab   : > { %v563_v8 = vadd.f32 %v562_v5, %v561_v4  ;;  %v601_v16 = vsel %vm378_vm0, %v593_v13, 0.0  ;;  %vm605_vm0 = vcmask 7168  }
  0xac   : > { %v555_v9 = vrot.slane %v554_v6, 4  ;;  %v602_v17 = vadd.f32 %v601_v16, %v600_v14 }
  0xad   : > { %v564_v10 = vrot.slane %v563_v8, 4 }
  0xae   : > { %v556_v12 = vadd.f32 %v555_v9, %v554_v6  ;;  %603 = vadd.xlane.f32.xlu2 %v602_v17 }
  0xaf   : > { %v565_v15 = vadd.f32 %v564_v10, %v563_v8 }
  0xb0   : > { %v557_v18 = vrot.slane %v556_v12, 2 }
  0xb1   : > { %v566_v19 = vrot.slane %v565_v15, 2 }
  0xb2   : > { %v558_v20 = vadd.f32 %v557_v18, %v556_v12 }
  0xb3   : > { %v567_v21 = vadd.f32 %v566_v19, %v565_v15 }
  0xb4   : > { %v559_v22 = vrot.slane %v558_v20, 1 }
  0xb5   : > { %v568_v23 = vrot.slane %v567_v21, 1 }
  0xb6   : > { %v560_v26 = vadd.f32 %v559_v22, %v558_v20 }
  0xb7   : > { %v569_v24 = vadd.f32 %v568_v23, %v567_v21 }
  0xb9   : > { %v574_v27 = vrot.slane %v569_v24, 7 }
  0xbb   : > { %v576_v29 = vsel %vm575_vm7, %v560_v26, %v574_v27 }
  0xbc   : > { %v578_v30 = vsel %vm571_vm8, 0.0, %v576_v29 }
  0xbd   : > { %v579_v31 = vadd.f32 %v578_v30, %v570_v28 }
  0xbf   : > { %584 = vst.msk [vmem:[#allocation3] sm:$0x3] %vm985_vm1, %v579_v31  ;;  %vm621_vm1 = vcmask 0  }
  0xc6   : > { %v610_v32 = vld [vmem:[#allocation3] sm:$0x3] }
  0xc7   : > { %v612_v33 = vperm.slane %v610_v32, 0  ;;  %v613_v34 = vperm.slane %v610_v32, 1 }
  0xc9   : > { %v616_v35 = vsel %vm575_vm7, %v612_v33, 0.0  ;;  %v617_v36 = vsel %vm575_vm7, %v613_v34, 0.0 }
  0xca   : > { %v618_v37 = vadd.f32 %v617_v36, %v616_v35 }
  0xcc   : > { %619 = vadd.xlane.f32.xlu0 %v618_v37 }
 0x115   : > { %v599_v1 = vpop.xlane.xlu2 %598 }
 0x116   : > { %607 = vst.msk [vmem:[%s347_s17 + $0x8] sm:$0xff] %vm605_vm0, %v599_v1  ;;  %v596_v38 = vpop.xlane.xlu1 %595 }
 0x117   : > { %606 = vst.msk [vmem:[%s347_s17] sm:$0xff] %vm605_vm0, %v596_v38 }
 0x121   : > { %v604_v7 = vpop.xlane.xlu2 %603 }
 0x122   : > { %609 = vst.msk [vmem:[%s347_s17 + $0x10] sm:$0x7] %vm608_vm9, %v604_v7 }
 0x13f   : > { %v620_v39 = vpop.xlane.xlu0 %619 }
 0x140   : > { %622 = vst.msk [vmem:[%s352_s24] sm:$0x1] %vm621_vm1, %v620_v39 }
 0x141 PF: > { %s16_s20 = sadd.s32 1, %s886_s20   ;;  %s1083_s18 = smov %s882_s19 }
 0x142   : > { %p13_p5 = scmp.ge.s32.totalorder %s16_s20, 4   ;;  %s1084_s19 = smov %s1086_s21 }
 0x144   :  { %15 = sbr.rel (!%p13_p5) target bundleno = 2 (0x2), region = 97 }

</bundles_post_ra>
